<compile_context>
chip_gen: v7x
topology: tpu7x:2x2x1
jax: 0.10.0
libtpu: 0.0.40
codegen_flags: <defaults>
</compile_context>

<pallas_src>
import functools

import jax
import jax.numpy as jnp
from jax.experimental import pallas as pl
from jax.experimental.pallas import tpu as pltpu


def _ce_acc_kernel(x_ref, y_ref, loss_ref, cnt_ref, *, total_b, tile_b, tiles_per_core):
    """One batch tile: accumulate CE-loss sum and correct-prediction count.

    x_ref:    [tile_b, C] logits (native dtype, cast to f32 in-kernel)
    y_ref:    [tile_b, 1] int32 labels
    loss_ref: [1, 1, 1] f32 per-core partial sum (resident across the inner axis)
    cnt_ref:  [1, 1, 1] f32 per-core partial correct count
    """
    p = pl.program_id(0)   # core / partial-sum slot ("parallel")
    i = pl.program_id(1)   # batch tile within this core ("arbitrary")

    @pl.when(i == 0)
    def _init():
        loss_ref[...] = jnp.zeros_like(loss_ref)
        cnt_ref[...] = jnp.zeros_like(cnt_ref)

    # f32 math in-kernel (v5e has no bf16 VPU/EUP); input stays narrow in HBM.
    x = x_ref[...].astype(jnp.float32)          # [TB, C]
    y = y_ref[...]                              # [TB, 1] int32
    tb, c = x.shape

    # Row offsets from the *unclamped* global tile id; rows past the real batch
    # (ragged last tile, or fully-padded tail tiles on the last core) are masked.
    global_tile = p * tiles_per_core + i
    row = jax.lax.broadcasted_iota(jnp.int32, (tb, 1), 0) + global_tile * tile_b
    valid = row < total_b                       # [TB, 1] bool

    # [1, C] lane iota; broadcast across sublanes in the compare (cheaper than a
    # full [TB, C] iota every grid step).
    col = jax.lax.broadcasted_iota(jnp.int32, (1, c), 1)

    # Numerically stable log-softmax cross entropy (matches nn.CrossEntropyLoss;
    # the mean reduction over B happens in the wrapper).
    row_max = jnp.max(x, axis=-1, keepdims=True)                       # [TB, 1]
    shifted = x - row_max                                              # [TB, C]
    lse = jnp.log(jnp.sum(jnp.exp(shifted), axis=-1, keepdims=True))   # [TB, 1]
    label_shifted = jnp.sum(jnp.where(col == y, shifted, 0.0),
                            axis=-1, keepdims=True)                    # [TB, 1]
    nll = lse - label_shifted                                          # [TB, 1]

    # torch.max(outputs,1)==y  <=>  the label column attains the row max.
    # (Exact ties with an earlier column count as correct here; torch would not.)
    correct = label_shifted == 0.0                                     # [TB, 1] bool

    loss_part = jnp.sum(jnp.where(valid, nll, 0.0), axis=0, keepdims=True)       # [1,1]
    cnt_part = jnp.sum(jnp.where(valid & correct, 1.0, 0.0), axis=0, keepdims=True)
    loss_ref[...] += loss_part.reshape(1, 1, 1)
    cnt_ref[...] += cnt_part.reshape(1, 1, 1)


def cross_entropy_and_accuracy(logits, labels, *, tile_b=None,
                               vmem_budget_bytes=12 * 1024 * 1024):
    """logits [B, C] (any float dtype), labels [B] int -> (mean CE loss, accuracy)."""
    B, C = logits.shape
    labels2d = labels.reshape(B, 1).astype(jnp.int32)
    itemsize = jnp.dtype(logits.dtype).itemsize

    # Size the batch tile from the *padded* VMEM footprint per row:
    #   logits row pads to ceil(C/128)*128 lanes; the (tile_b,1) int32 labels block
    #   pads lane 1 -> 128 (the 128x inflation the review flagged).
    # Budget ~12 MiB for the double-buffered (x2) input working set — comfortably
    # inside v5e's 16 MiB scoped default and v7x's 64 MiB physical VMEM.
    if tile_b is None:
        lane = 128
        padded_logits_row = max(1, pl.cdiv(C, lane)) * lane * itemsize
        padded_label_row = lane * 4
        bytes_per_row = padded_logits_row + padded_label_row
        granule = 8 if itemsize >= 4 else 16     # sublane packing granule
        tile_b = vmem_budget_bytes // (2 * bytes_per_row)
        tile_b = max(granule, (tile_b // granule) * granule)
    if tile_b >= B:
        tile_b = B                      # single full-height block, no ragged edge
    assert tile_b == B or tile_b % 8 == 0, "tile_b must be a multiple of 8 or == B"

    num_blocks = pl.cdiv(B, tile_b)
    num_cores = 2 if num_blocks >= 2 else 1      # v7x has 2 TCs; harmless elsewhere
    tiles_per_core = pl.cdiv(num_blocks, num_cores)
    last_block = num_blocks - 1

    kernel = functools.partial(_ce_acc_kernel, total_b=B, tile_b=tile_b,
                               tiles_per_core=tiles_per_core)
    vmem = pltpu.MemorySpace.VMEM

    # Clamp block indices so padded tail grid steps (num_cores*tiles_per_core may
    # exceed num_blocks) re-read the last real block; their rows are masked anyway.
    def in_map(p, i):
        return (jnp.minimum(p * tiles_per_core + i, last_block), 0)

    cost = pl.CostEstimate(
        flops=int(6 * B * C),
        transcendentals=int(B * C + B),
        bytes_accessed=int(B * C * itemsize + B * 4 + 8 * num_cores),
    )

    loss_parts, cnt_parts = pl.pallas_call(
        kernel,
        out_shape=(
            jax.ShapeDtypeStruct((num_cores, 1, 1), jnp.float32),   # CE loss sums
            jax.ShapeDtypeStruct((num_cores, 1, 1), jnp.float32),   # correct counts
        ),
        grid=(num_cores, tiles_per_core),
        in_specs=[
            pl.BlockSpec((tile_b, C), in_map, memory_space=vmem),
            pl.BlockSpec((tile_b, 1), in_map, memory_space=vmem),
        ],
        out_specs=(
            pl.BlockSpec((1, 1, 1), lambda p, i: (p, 0, 0), memory_space=vmem),
            pl.BlockSpec((1, 1, 1), lambda p, i: (p, 0, 0), memory_space=vmem),
        ),
        compiler_params=pltpu.CompilerParams(
            dimension_semantics=("parallel", "arbitrary"),
            vmem_limit_bytes=32 * 1024 * 1024,
        ),
        cost_estimate=cost,
    )(logits, labels2d)

    inv_b = jnp.float32(1.0 / B)
    return jnp.sum(loss_parts) * inv_b, jnp.sum(cnt_parts) * inv_b


def _reference(logits, labels):
    lf32 = logits.astype(jnp.float32)
    logp = jax.nn.log_softmax(lf32, axis=-1)
    b = logits.shape[0]
    ref_loss = -jnp.mean(logp[jnp.arange(b), labels])
    # Accuracy with the same tie rule as the kernel: correct iff the label column
    # attains the row max (torch.max's first-index tie-break differs only on exact
    # bitwise ties, vanishingly rare with float logits).
    label_val = lf32[jnp.arange(b), labels]
    ref_acc = jnp.mean((label_val == jnp.max(lf32, axis=-1)).astype(jnp.float32))
    return ref_loss, ref_acc


if __name__ == "__main__":
    key = jax.random.PRNGKey(0)
    k1, k2, k3, k4, k5, k6 = jax.random.split(key, 6)

    # Case 1: f32 logits, ragged batch, forced small tiles -> grid (2 cores, 3
    # tiles/core) with a clamped+masked tail tile and a ragged last real tile.
    B1, C1 = 200, 10
    logits1 = jax.random.normal(k1, (B1, C1), dtype=jnp.float32)
    labels1 = jax.random.randint(k2, (B1,), 0, C1, dtype=jnp.int32)
    loss1, acc1 = cross_entropy_and_accuracy(logits1, labels1, tile_b=48)
    jax.block_until_ready((loss1, acc1))
    ref_loss1, ref_acc1 = _reference(logits1, labels1)
    assert jnp.allclose(loss1, ref_loss1, rtol=1e-5, atol=1e-4), (loss1, ref_loss1)
    assert abs(float(acc1) - float(ref_acc1)) < 1e-6, (acc1, ref_acc1)

    # Case 2: bf16 logits consumed in native dtype (f32 math in-kernel), 2x2 grid.
    B2, C2 = 96, 32
    logits2 = jax.random.normal(k3, (B2, C2), dtype=jnp.bfloat16)
    labels2 = jax.random.randint(k4, (B2,), 0, C2, dtype=jnp.int32)
    loss2, acc2 = cross_entropy_and_accuracy(logits2, labels2, tile_b=32)
    jax.block_until_ready((loss2, acc2))
    ref_loss2, ref_acc2 = _reference(logits2, labels2)
    assert jnp.allclose(loss2, ref_loss2, rtol=1e-5, atol=1e-4), (loss2, ref_loss2)
    assert abs(float(acc2) - float(ref_acc2)) < 1e-6, (acc2, ref_acc2)

    # Case 3: automatic (padded-footprint) tile sizing -> single full-height block.
    B3, C3 = 64, 10
    logits3 = jax.random.normal(k5, (B3, C3), dtype=jnp.float32)
    labels3 = jax.random.randint(k6, (B3,), 0, C3, dtype=jnp.int32)
    loss3, acc3 = cross_entropy_and_accuracy(logits3, labels3)
    jax.block_until_ready((loss3, acc3))
    ref_loss3, ref_acc3 = _reference(logits3, labels3)
    assert jnp.allclose(loss3, ref_loss3, rtol=1e-5, atol=1e-4), (loss3, ref_loss3)
    assert abs(float(acc3) - float(ref_acc3)) < 1e-6, (acc3, ref_acc3)

    print("KERNEL_OK")
</pallas_src>

<mosaic_0001>
module attributes {stable_mosaic.version = 11 : i64} {
  func.func @_ce_acc_kernel(%arg0: i32, %arg1: i32, %arg2: memref<48x10xf32, #tpu.memory_space<vmem>>, %arg3: memref<48x1xi32, #tpu.memory_space<vmem>>, %arg4: memref<1x1x1xf32, #tpu.memory_space<vmem>>, %arg5: memref<1x1x1xf32, #tpu.memory_space<vmem>>) attributes {dimension_semantics = [#tpu.dimension_semantics<parallel>, #tpu.dimension_semantics<arbitrary>], iteration_bounds = array<i64: 2, 3>, scalar_prefetch = 0 : i64, scratch_operands = 0 : i64, tpu.core_type = #tpu.core_type<tc>, window_params = [{transform_indices = @transform_0, window_bounds = array<i64: 48, 10>}, {transform_indices = @transform_1, window_bounds = array<i64: 48, 1>}, {transform_indices = @transform_2, window_bounds = array<i64: 1, 1, 1>}, {transform_indices = @transform_3, window_bounds = array<i64: 1, 1, 1>}]} {
    %c0_i32 = arith.constant 0 : i32
    %0 = arith.cmpi eq, %arg1, %c0_i32 : i32
    %1 = arith.extui %0 : i1 to i32
    %c0_i32_0 = arith.constant 0 : i32
    %2 = arith.cmpi ne, %1, %c0_i32_0 : i32
    scf.if %2 {
      %cst_25 = arith.constant 0.000000e+00 : f32
      %50 = vector.broadcast %cst_25 : f32 to vector<1x1x1xf32>
      %c0_26 = arith.constant 0 : index
      %c0_27 = arith.constant 0 : index
      %c0_28 = arith.constant 0 : index
      %51 = vector.load %arg4[%c0_26, %c0_27, %c0_28] : memref<1x1x1xf32, #tpu.memory_space<vmem>>, vector<1x1x1xf32>
      tpu.vector_store %arg4[%c0_26, %c0_27, %c0_28], %50 {strides = array<i32>} : memref<1x1x1xf32, #tpu.memory_space<vmem>>, vector<1x1x1xf32>,
      %cst_29 = arith.constant 0.000000e+00 : f32
      %52 = vector.broadcast %cst_29 : f32 to vector<1x1x1xf32>
      %c0_30 = arith.constant 0 : index
      %c0_31 = arith.constant 0 : index
      %c0_32 = arith.constant 0 : index
      %53 = vector.load %arg5[%c0_30, %c0_31, %c0_32] : memref<1x1x1xf32, #tpu.memory_space<vmem>>, vector<1x1x1xf32>
      tpu.vector_store %arg5[%c0_30, %c0_31, %c0_32], %52 {strides = array<i32>} : memref<1x1x1xf32, #tpu.memory_space<vmem>>, vector<1x1x1xf32>,
    } else {
    }
    %c0 = arith.constant 0 : index
    %c0_1 = arith.constant 0 : index
    %3 = vector.load %arg2[%c0, %c0_1] : memref<48x10xf32, #tpu.memory_space<vmem>>, vector<48x10xf32>
    %c0_2 = arith.constant 0 : index
    %c0_3 = arith.constant 0 : index
    %4 = vector.load %arg3[%c0_2, %c0_3] : memref<48x1xi32, #tpu.memory_space<vmem>>, vector<48x1xi32>
    %c3_i32 = arith.constant 3 : i32
    %5 = arith.muli %arg0, %c3_i32 : i32
    %6 = arith.addi %5, %arg1 : i32
    %7 = tpu.iota {dimensions = array<i32: 0>} : vector<48x1xi32>
    %c48_i32 = arith.constant 48 : i32
    %8 = arith.muli %6, %c48_i32 : i32
    %9 = vector.broadcast %8 : i32 to vector<48x1xi32>
    %10 = arith.addi %7, %9 : vector<48x1xi32>
    %c200_i32 = arith.constant 200 : i32
    %11 = vector.broadcast %c200_i32 : i32 to vector<48x1xi32>
    %12 = arith.cmpi slt, %10, %11 : vector<48x1xi32>
    %13 = tpu.iota {dimensions = array<i32: 1>} : vector<1x10xi32>
    %cst = arith.constant dense<0xFF800000> : vector<48xf32>
    %14 = vector.multi_reduction <maximumf>, %3, %cst [1] : vector<48x10xf32> to vector<48xf32>
    %15 = vector.shape_cast %14 : vector<48xf32> to vector<48x1xf32>
    %16 = vector.broadcast %15 : vector<48x1xf32> to vector<48x10xf32>
    %17 = arith.subf %3, %16 : vector<48x10xf32>
    %18 = math.exp %17 : vector<48x10xf32>
    %cst_4 = arith.constant dense<0.000000e+00> : vector<48xf32>
    %19 = vector.multi_reduction <add>, %18, %cst_4 [1] : vector<48x10xf32> to vector<48xf32>
    %20 = vector.shape_cast %19 : vector<48xf32> to vector<48x1xf32>
    %21 = math.log %20 : vector<48x1xf32>
    %22 = vector.broadcast %13 : vector<1x10xi32> to vector<48x10xi32>
    %23 = vector.broadcast %4 : vector<48x1xi32> to vector<48x10xi32>
    %24 = arith.cmpi eq, %22, %23 : vector<48x10xi32>
    %cst_5 = arith.constant 0.000000e+00 : f32
    %25 = vector.broadcast %cst_5 : f32 to vector<48x10xf32>
    %26 = arith.select %24, %17, %25 : vector<48x10xi1>, vector<48x10xf32>
    %cst_6 = arith.constant dense<0.000000e+00> : vector<48xf32>
    %27 = vector.multi_reduction <add>, %26, %cst_6 [1] : vector<48x10xf32> to vector<48xf32>
    %28 = vector.shape_cast %27 : vector<48xf32> to vector<48x1xf32>
    %29 = arith.subf %21, %28 : vector<48x1xf32>
    %cst_7 = arith.constant 0.000000e+00 : f32
    %30 = vector.broadcast %cst_7 : f32 to vector<48x1xf32>
    %31 = arith.cmpf oeq, %28, %30 : vector<48x1xf32>
    %cst_8 = arith.constant 0.000000e+00 : f32
    %32 = vector.broadcast %cst_8 : f32 to vector<48x1xf32>
    %33 = arith.select %12, %29, %32 : vector<48x1xi1>, vector<48x1xf32>
    %cst_9 = arith.constant dense<0.000000e+00> : vector<1xf32>
    %34 = vector.multi_reduction <add>, %33, %cst_9 [0] : vector<48x1xf32> to vector<1xf32>
    %35 = vector.shape_cast %34 : vector<1xf32> to vector<1x1xf32>
    %36 = arith.andi %12, %31 : vector<48x1xi1>
    %cst_10 = arith.constant 1.000000e+00 : f32
    %cst_11 = arith.constant 0.000000e+00 : f32
    %37 = vector.broadcast %cst_10 : f32 to vector<48x1xf32>
    %38 = vector.broadcast %cst_11 : f32 to vector<48x1xf32>
    %39 = arith.select %36, %37, %38 : vector<48x1xi1>, vector<48x1xf32>
    %cst_12 = arith.constant dense<0.000000e+00> : vector<1xf32>
    %40 = vector.multi_reduction <add>, %39, %cst_12 [0] : vector<48x1xf32> to vector<1xf32>
    %41 = vector.shape_cast %40 : vector<1xf32> to vector<1x1xf32>
    %c0_13 = arith.constant 0 : index
    %c0_14 = arith.constant 0 : index
    %c0_15 = arith.constant 0 : index
    %42 = vector.load %arg4[%c0_13, %c0_14, %c0_15] : memref<1x1x1xf32, #tpu.memory_space<vmem>>, vector<1x1x1xf32>
    %43 = vector.shape_cast %35 : vector<1x1xf32> to vector<1x1x1xf32>
    %44 = arith.addf %42, %43 : vector<1x1x1xf32>
    %c0_16 = arith.constant 0 : index
    %c0_17 = arith.constant 0 : index
    %c0_18 = arith.constant 0 : index
    %45 = vector.load %arg4[%c0_16, %c0_17, %c0_18] : memref<1x1x1xf32, #tpu.memory_space<vmem>>, vector<1x1x1xf32>
    tpu.vector_store %arg4[%c0_16, %c0_17, %c0_18], %44 {strides = array<i32>} : memref<1x1x1xf32, #tpu.memory_space<vmem>>, vector<1x1x1xf32>,
    %c0_19 = arith.constant 0 : index
    %c0_20 = arith.constant 0 : index
    %c0_21 = arith.constant 0 : index
    %46 = vector.load %arg5[%c0_19, %c0_20, %c0_21] : memref<1x1x1xf32, #tpu.memory_space<vmem>>, vector<1x1x1xf32>
    %47 = vector.shape_cast %41 : vector<1x1xf32> to vector<1x1x1xf32>
    %48 = arith.addf %46, %47 : vector<1x1x1xf32>
    %c0_22 = arith.constant 0 : index
    %c0_23 = arith.constant 0 : index
    %c0_24 = arith.constant 0 : index
    %49 = vector.load %arg5[%c0_22, %c0_23, %c0_24] : memref<1x1x1xf32, #tpu.memory_space<vmem>>, vector<1x1x1xf32>
    tpu.vector_store %arg5[%c0_22, %c0_23, %c0_24], %48 {strides = array<i32>} : memref<1x1x1xf32, #tpu.memory_space<vmem>>, vector<1x1x1xf32>,
    return
  }
  func.func @transform_0(%arg0: i32, %arg1: i32) -> (i32, i32) {
    %c3_i32 = arith.constant 3 : i32
    %0 = arith.muli %arg0, %c3_i32 : i32
    %1 = arith.addi %0, %arg1 : i32
    %c4_i32 = arith.constant 4 : i32
    %2 = arith.minsi %1, %c4_i32 : i32
    %c0_i32 = arith.constant 0 : i32
    %c0_i32_0 = arith.constant 0 : i32
    return %2, %c0_i32 : i32, i32
  }
  func.func @transform_1(%arg0: i32, %arg1: i32) -> (i32, i32) {
    %c3_i32 = arith.constant 3 : i32
    %0 = arith.muli %arg0, %c3_i32 : i32
    %1 = arith.addi %0, %arg1 : i32
    %c4_i32 = arith.constant 4 : i32
    %2 = arith.minsi %1, %c4_i32 : i32
    %c0_i32 = arith.constant 0 : i32
    %c0_i32_0 = arith.constant 0 : i32
    return %2, %c0_i32 : i32, i32
  }
  func.func @transform_2(%arg0: i32, %arg1: i32) -> (i32, i32, i32) {
    %c0_i32 = arith.constant 0 : i32
    %c0_i32_0 = arith.constant 0 : i32
    %c0_i32_1 = arith.constant 0 : i32
    return %arg0, %c0_i32, %c0_i32_0 : i32, i32, i32
  }
  func.func @transform_3(%arg0: i32, %arg1: i32) -> (i32, i32, i32) {
    %c0_i32 = arith.constant 0 : i32
    %c0_i32_0 = arith.constant 0 : i32
    %c0_i32_1 = arith.constant 0 : i32
    return %arg0, %c0_i32, %c0_i32_0 : i32, i32, i32
  }
}

</mosaic_0001>

<bundles_post_ra>
// kernel: tpu_custom_call.1
= control target key start
LH: loop header
LB: loop body
LE: loop exit
PB: predicated region body
PF: predicated region fallthrough
CT: control target
= control target key end

     0   :  { %s763_s12 = smov 0   ;;  %s765_s13 = smov 0   ;;  %s877_s0 = inlined_call_operand.vmem [shape: f32[200,10], index: 0, kind: input, shape index: {}]   ;;  %s878_s1 = inlined_call_operand.vmem [shape: s32[200,1], index: 1, kind: input, shape index: {}]   ;;  %s879_s2 = inlined_call_operand.vmem [shape: f32[2,1,1], index: 2, kind: output, shape index: {0}]   ;;  %s880_s3 = inlined_call_operand.vmem [shape: f32[2,1,1], index: 3, kind: output, shape index: {1}]  }
   0x1   :  { %s767_s14 = smov 0   ;;  %s769_s15 = smov 0  }
   0x2   :  { %s771_s16 = smov 0  }
   0x3 LB: > { %s23_s17 = sadd.s32 1, %s730_s14  ;;  %s26_s18 = sadd.s32 1, %s734_s15  ;;  %s738_s16 = sphi %s771_s16, %s14_s16   ;;  %s734_s15 = sphi %s769_s15, %s884_s15   ;;  %s730_s14 = sphi %s767_s14, %s883_s14   ;;  %s726_s13 = sphi %s765_s13, %s882_s13   ;;  %s722_s12 = sphi %s763_s12, %s881_s12  }
   0x4   : > { %p24_p0 = scmp.ge.s32.totalorder %s23_s17, 3  ;;  %p625_p1 = scmp.ge.s32.totalorder %s738_s16, 1 }
   0x5   : > { %p212_p2 = scmp.lt.s32.totalorder %s738_s16, 7 }
   0x6   : > { %s886_s17 = smov (%p24_p0, %s23_s17), 0  ;;  %s888_s18 = smov (!%p24_p0, %s26_s18), %s734_s15 }
   0x7   : > { %p213_p3 = pnand %p625_p1, %p212_p2  ;;  %p28_p4 = scmp.ge.s32.totalorder %s888_s18, 2 }
   0x8   : > { %s258_s19 = smul.u32 (!%p213_p3), 3, %s726_s13  ;;  %p302_p5 = scmp.lt.s32.totalorder (!%p213_p3), %s726_s13, 1 }
   0x9   : > { %s890_s18 = smov (%p28_p4, %s888_s18), 0  ;;  %216 = sbr.rel (%p213_p3) target bundleno = 376 (0x178), region = 28 }
   0xa   : > { %s796_s20 = sadd.s32 (!%p213_p3), %s722_s12, %s258_s19  ;;  %p628_p8 = scmp.ne.s32.totalorder (!%p213_p3), %s722_s12, 0 }
   0xb   : > { %p260_p6 = scmp.lt.s32.totalorder (!%p213_p3), %s796_s20, 4 }
  0x10   : > { %s892_s13 = smov (!%p302_p5, %s726_s13), 1  ;;  %vm312_vm0 = vcmask (!%p628_p8), 0   ;;  %v740_v0 = vmov (!%p628_p8), 0.0  }
  0x11   : > { %s261_s21 = scalar_select %p260_p6, %s796_s20, 4 }
  0x12   : > { %s803_s24 = scalar_lea.vmem %s879_s2, %s892_s13  ;;  %s808_s27 = scalar_lea.vmem %s880_s3, %s892_s13 }
  0x13   : > { %s262_s28 = smul.u32 6, %s261_s21  ;;  %313 = vst.msk [vmem:[%s803_s24] sm:$0x1] (!%p628_p8), %vm312_vm0, %v740_v0  ;;  %314 = vst.msk [vmem:[%s808_s27] sm:$0x1] (!%p628_p8), %vm312_vm0, %v740_v0 }
  0x14   : > { %311 = sbr.rel (%p628_p8) target bundleno = 27 (0x1b), region = 32 }
  0x15   : > { %p267_p7 = scmp.lt.s32.totalorder %s262_s28, 24 }
  0x17   : > { %s894_s28 = smov (!%p267_p7, %s262_s28), 24 }
  0x18   : > { %s626_s29 = sshll.u32 %s894_s28, 3 }
  0x19   : > { %s270_s5 = scalar_lea.vmem %s877_s0, %s626_s29  ;;  %s816_s8 = scalar_lea.vmem %s878_s1, %s626_s29 }
  0x1b PF: > { %v317_v1 = vld [vmem:[%s270_s5 + $0x10] sm:$0xff]  ;;  %vm352_vm1 = vcmask 80896   ;;  %v315_v2 = vld [vmem:[%s270_s5] sm:$0xff]  ;;  %v318_v3 = vld [vmem:[%s270_s5 + $0x18] sm:$0xff]  ;;  %v741_v7 = vmov 0   ;;  %v329_v42 = vlaneseq  ;;  %s336_s9 = smul.u32 48, %s796_s20 }
  0x1c   : > { %v359_v4 = vsel %vm352_vm1, %v317_v1, -inf  ;;  %v353_v5 = vsel %vm352_vm1, %v315_v2, -inf  ;;  %v316_v6 = vld [vmem:[%s270_s5 + $0x8] sm:$0xff]  ;;  %675 = vset.pattern.permute.xlu1 %v741_v7  ;;  %674 = vset.pattern.permute.xlu0 %v741_v7  ;;  %v362_v8 = vsel %vm352_vm1, %v318_v3, -inf  ;;  %v319_v11 = vld [vmem:[%s270_s5 + $0x20] sm:$0xff]  ;;  %v323_v15 = vld [vmem:[%s816_s8 + $0x10] sm:$0xff] }
  0x1d   : > { %360 = vmax.xlane.f32.xlu1 %v359_v4  ;;  %354 = vmax.xlane.f32.xlu0 %v353_v5  ;;  %v356_v9 = vsel %vm352_vm1, %v316_v6, -inf  ;;  %v320_v10 = vld [vmem:[%s270_s5 + $0x28] sm:$0xff]  ;;  %v365_v13 = vsel %vm352_vm1, %v319_v11, -inf  ;;  %v321_v16 = vld [vmem:[%s816_s8] sm:$0xff]  ;;  %v324_v17 = vld [vmem:[%s816_s8 + $0x18] sm:$0xff]  ;;  %v351_v49 = vand.u32 127, %v329_v42 }
  0x1e   : > { %v368_v12 = vsel %vm352_vm1, %v320_v10, -inf  ;;  %v322_v14 = vld [vmem:[%s816_s8 + $0x8] sm:$0xff]  ;;  %v325_v18 = vld [vmem:[%s816_s8 + $0x20] sm:$0xff] }
  0x1f   : > { %v326_v19 = vld [vmem:[%s816_s8 + $0x28] sm:$0xff] }
  0x21   : > { %363 = vmax.xlane.f32.xlu1 %v362_v8  ;;  %357 = vmax.xlane.f32.xlu0 %v356_v9  ;;  %v330_v9 = vshrl.u32 %v329_v42, 7 }
  0x25   : > { %369 = vmax.xlane.f32.xlu1 %v368_v12  ;;  %366 = vmax.xlane.f32.xlu0 %v365_v13 }
  0x36   : > { %423 = vperm.xlu1 %675, %v322_v14   ;;  %v332_v14 = vadd.s32 16, %v330_v9 }
  0x3a   : > { %426 = vperm.xlu1 %675, %v323_v15  }
  0x3b   : > { %420 = vperm.xlu0 %674, %v321_v16   ;;  %v333_v16 = vadd.s32 24, %v330_v9 }
  0x3e   : > { %429 = vperm.xlu1 %675, %v324_v17   ;;  %v334_v17 = vadd.s32 32, %v330_v9 }
  0x42   : > { %432 = vperm.xlu1 %675, %v325_v18  }
  0x46   : > { %435 = vperm.xlu1 %675, %v326_v19  }
  0xaa   : > { %v361_v20 = vpop.xlane.xlu1 %360  ;;  %v355_v21 = vpop.xlane.xlu0 %354 }
  0xab   : > { %v373_v22 = vsub.f32 %v317_v1, %v361_v20  ;;  %v371_v23 = vsub.f32 %v315_v2, %v355_v21 }
  0xad   : > { %v381_v24 = vmul.f32 1.442695, %v373_v22  ;;  %v377_v25 = vmul.f32 1.442695, %v371_v23 }
  0xae   : > { %v364_v26 = vpop.xlane.xlu1 %363  ;;  %v358_v27 = vpop.xlane.xlu0 %357 }
  0xaf   : > { %676 = vpow2.f32 %v381_v24  ;;  %v374_v28 = vsub.f32 %v318_v3, %v364_v26  ;;  %v372_v29 = vsub.f32 %v316_v6, %v358_v27  ;;  %v335_v26 = vadd.s32 40, %v330_v9 }
  0xb0   : > { %678 = vpow2.f32 %v377_v25 }
  0xb1   : > { %v383_v30 = vmul.f32 1.442695, %v374_v28  ;;  %v379_v31 = vmul.f32 1.442695, %v372_v29 }
  0xb2   : > { %v370_v32 = vpop.xlane.xlu1 %369  ;;  %v367_v33 = vpop.xlane.xlu0 %366 }
  0xb3   : > { %680 = vpow2.f32 %v383_v30  ;;  %v376_v34 = vsub.f32 %v320_v10, %v370_v32  ;;  %v375_v35 = vsub.f32 %v319_v11, %v367_v33  ;;  %v337_v10 = vstv %s336_s9 }
  0xb4   : > { %682 = vpow2.f32 %v379_v31  ;;  %v331_v11 = vadd.s32 8, %v330_v9  ;;  %v338_v15 = vadd.s32 %v337_v10, %v330_v9  ;;  %v341_v24 = vadd.s32 %v337_v10, %v333_v16 }
  0xb5   : > { %v387_v36 = vmul.f32 1.442695, %v376_v34  ;;  %v385_v37 = vmul.f32 1.442695, %v375_v35  ;;  %v342_v25 = vadd.s32 %v337_v10, %v334_v17  ;;  %v523_v17 = vld [vmem:[%s808_s27] sm:$0x1] }
  0xb6   : > { %v424_v38 = vpop.permute.xlu1 %423  ;;  %v339_v19 = vadd.s32 %v337_v10, %v331_v11  ;;  %vm344_vm8 = vcmp.lt.s32.totalorder %v338_v15, 200  ;;  %vm347_vm0 = vcmp.lt.s32.totalorder %v341_v24, 200 }
  0xb7   : > { %684 = vpow2.f32 %v387_v36  ;;  %vm438_vm3 = vcmp.eq.s32.totalorder %v351_v49, %v424_v38  ;;  %v742_v36 = vmov 0.0  }
  0xb8   : > { %686 = vpow2.f32 %v385_v37  ;;  %v444_v59 = vsel %vm438_vm3, %v372_v29, 0.0  ;;  %vm345_vm10 = vcmp.lt.s32.totalorder %v339_v19, 200 }
  0xb9   : > { %v677_v39 = vpop.eup %676  ;;  %v452_v62 = vsel %vm352_vm1, %v444_v59, 0.0 }
  0xba   : > { %v679_v40 = vpop.eup %678  ;;  %v427_v41 = vpop.permute.xlu1 %426  ;;  %v395_v45 = vsel %vm352_vm1, %v677_v39, 0.0 }
  0xbb   : > { %v389_v43 = vsel %vm352_vm1, %v679_v40, 0.0  ;;  %v421_v47 = vpop.permute.xlu0 %420  ;;  %vm439_vm4 = vcmp.eq.s32.totalorder %v351_v49, %v427_v41 }
  0xbc   : > { %390 = vadd.xlane.f32.xlu1 %v389_v43  ;;  %vm437_vm2 = vcmp.eq.s32.totalorder %v351_v49, %v421_v47  ;;  %v445_v60 = vsel %vm439_vm4, %v373_v22, 0.0 }
  0xbd   : > { %v681_v44 = vpop.eup %680  ;;  %v443_v56 = vsel %vm437_vm2, %v371_v23, 0.0  ;;  %v455_v63 = vsel %vm352_vm1, %v445_v60, 0.0  ;;  %v340_v23 = vadd.s32 %v337_v10, %v332_v14 }
  0xbe   : > { %v683_v46 = vpop.eup %682  ;;  %v430_v48 = vpop.permute.xlu1 %429  ;;  %v398_v52 = vsel %vm352_vm1, %v681_v44, 0.0  ;;  %v449_v58 = vsel %vm352_vm1, %v443_v56, 0.0 }
  0xbf   : > { %v392_v50 = vsel %vm352_vm1, %v683_v46, 0.0  ;;  %vm440_vm5 = vcmp.eq.s32.totalorder %v351_v49, %v430_v48  ;;  %vm346_vm12 = vcmp.lt.s32.totalorder %v340_v23, 200 }
  0xc0   : > { %396 = vadd.xlane.f32.xlu1 %v395_v45  ;;  %393 = vadd.xlane.f32.xlu0 %v392_v50  ;;  %v446_v0 = vsel %vm440_vm5, %v374_v28, 0.0 }
  0xc1   : > { %v685_v51 = vpop.eup %684  ;;  %v458_v2 = vsel %vm352_vm1, %v446_v0, 0.0 }
  0xc2   : > { %v687_v53 = vpop.eup %686  ;;  %v433_v55 = vpop.permute.xlu1 %432  ;;  %v404_v57 = vsel %vm352_vm1, %v685_v51, 0.0 }
  0xc3   : > { %v401_v54 = vsel %vm352_vm1, %v687_v53, 0.0  ;;  %vm441_vm6 = vcmp.eq.s32.totalorder %v351_v49, %v433_v55 }
  0xc4   : > { %399 = vadd.xlane.f32.xlu1 %v398_v52  ;;  %402 = vadd.xlane.f32.xlu0 %v401_v54  ;;  %v447_v1 = vsel %vm441_vm6, %v375_v35, 0.0 }
  0xc5   : > { %v461_v3 = vsel %vm352_vm1, %v447_v1, 0.0 }
  0xc6   : > { %v436_v61 = vpop.permute.xlu1 %435 }
  0xc7   : > { %vm442_vm7 = vcmp.eq.s32.totalorder %v351_v49, %v436_v61 }
  0xc8   : > { %405 = vadd.xlane.f32.xlu1 %v404_v57  ;;  %450 = vadd.xlane.f32.xlu0 %v449_v58  ;;  %v448_v4 = vsel %vm442_vm7, %v376_v34, 0.0  ;;  %v343_v34 = vadd.s32 %v337_v10, %v335_v26 }
  0xc9   : > { %v464_v5 = vsel %vm352_vm1, %v448_v4, 0.0  ;;  %vm348_vm1 = vcmp.lt.s32.totalorder %v342_v25, 200 }
  0xca   : > { %vm349_vm7 = vcmp.lt.s32.totalorder %v343_v34, 200 }
  0xcc   : > { %453 = vadd.xlane.f32.xlu1 %v452_v62  ;;  %456 = vadd.xlane.f32.xlu0 %v455_v63 }
  0xd0   : > { %459 = vadd.xlane.f32.xlu1 %v458_v2  ;;  %462 = vadd.xlane.f32.xlu0 %v461_v3 }
  0xd4   : > { %465 = vadd.xlane.f32.xlu1 %v464_v5 }
 0x149   : > { %v391_v6 = vpop.xlane.xlu1 %390 }
 0x14a   : > { %688 = vlog2.f32 %v391_v6 }
 0x14d   : > { %v397_v7 = vpop.xlane.xlu1 %396  ;;  %v394_v8 = vpop.xlane.xlu0 %393 }
 0x14e   : > { %690 = vlog2.f32 %v397_v7 }
 0x14f   : > { %692 = vlog2.f32 %v394_v8 }
 0x151   : > { %v400_v12 = vpop.xlane.xlu1 %399  ;;  %v403_v13 = vpop.xlane.xlu0 %402 }
 0x152   : > { %694 = vlog2.f32 %v400_v12 }
 0x153   : > { %696 = vlog2.f32 %v403_v13 }
 0x154   : > { %v689_v18 = vpop.eup %688 }
 0x155   : > { %v408_v20 = vmul.f32 0.6931472, %v689_v18  ;;  %v406_v21 = vpop.xlane.xlu1 %405  ;;  %v451_v22 = vpop.xlane.xlu0 %450 }
 0x156   : > { %698 = vlog2.f32 %v406_v21  ;;  %vm473_vm9 = vcmp.eq.f32.partialorder %v451_v22, 0.0 }
 0x157   : > { %v467_v30 = vsub.f32 %v408_v20, %v451_v22  ;;  %vm496_vm11 = vmand %vm344_vm8, %vm473_vm9  ;;  %v519_v20 = vld [vmem:[%s803_s24] sm:$0x1] }
 0x158   : > { %v691_v27 = vpop.eup %690  ;;  %v502_v37 = vsel %vm496_vm11, 1.0, %v742_v36 }
 0x159   : > { %v693_v28 = vpop.eup %692  ;;  %v412_v29 = vmul.f32 0.6931472, %v691_v27  ;;  %v454_v31 = vpop.xlane.xlu1 %453  ;;  %v479_v43 = vsel %vm344_vm8, %v467_v30, 0.0 }
 0x15a   : > { %v457_v32 = vpop.xlane.xlu0 %456  ;;  %v410_v33 = vmul.f32 0.6931472, %v693_v28  ;;  %vm474_vm13 = vcmp.eq.f32.partialorder %v454_v31, 0.0 }
 0x15b   : > { %vm475_vm14 = vcmp.eq.f32.partialorder %v457_v32, 0.0  ;;  %vm497_vm15 = vmand %vm345_vm10, %vm474_vm13  ;;  %v469_v40 = vsub.f32 %v412_v29, %v457_v32 }
 0x15c   : > { %v695_v35 = vpop.eup %694  ;;  %v468_v38 = vsub.f32 %v410_v33, %v454_v31  ;;  %v503_v39 = vsel %vm497_vm15, 1.0, %v742_v36  ;;  %vm498_vm2 = vmand %vm346_vm12, %vm475_vm14 }
 0x15d   : > { %v697_v41 = vpop.eup %696  ;;  %v414_v42 = vmul.f32 0.6931472, %v695_v35  ;;  %v508_v44 = vadd.f32 %v503_v39, %v502_v37  ;;  %v504_v45 = vsel %vm498_vm2, 1.0, %v742_v36  ;;  %v460_v46 = vpop.xlane.xlu1 %459  ;;  %v481_v54 = vsel %vm346_vm12, %v469_v40, 0.0 }
 0x15e   : > { %v463_v47 = vpop.xlane.xlu0 %462  ;;  %v480_v48 = vsel %vm345_vm10, %v468_v38, 0.0  ;;  %vm476_vm3 = vcmp.eq.f32.partialorder %v460_v46, 0.0  ;;  %v416_v49 = vmul.f32 0.6931472, %v697_v41  ;;  %vm521_vm10 = vcmask 0  }
 0x15f   : > { %vm477_vm4 = vcmp.eq.f32.partialorder %v463_v47, 0.0  ;;  %v485_v50 = vadd.f32 %v480_v48, %v479_v43  ;;  %v509_v51 = vadd.f32 %v508_v44, %v504_v45  ;;  %v470_v52 = vsub.f32 %v414_v42, %v460_v46  ;;  %vm499_vm5 = vmand %vm347_vm0, %vm476_vm3 }
 0x160   : > { %v699_v53 = vpop.eup %698  ;;  %v505_v55 = vsel %vm499_vm5, 1.0, %v742_v36  ;;  %v471_v56 = vsub.f32 %v416_v49, %v463_v47  ;;  %vm500_vm6 = vmand %vm348_vm1, %vm477_vm4 }
 0x161   : > { %v486_v57 = vadd.f32 %v485_v50, %v481_v54  ;;  %v482_v58 = vsel %vm347_vm0, %v470_v52, 0.0  ;;  %v510_v59 = vadd.f32 %v509_v51, %v505_v55  ;;  %v466_v60 = vpop.xlane.xlu1 %465  ;;  %v506_v61 = vsel %vm500_vm6, 1.0, %v742_v36 }
 0x162   : > { %v418_v62 = vmul.f32 0.6931472, %v699_v53  ;;  %vm478_vm8 = vcmp.eq.f32.partialorder %v466_v60, 0.0  ;;  %v483_v1 = vsel %vm348_vm1, %v471_v56, 0.0 }
 0x163   : > { %v487_v63 = vadd.f32 %v486_v57, %v482_v58  ;;  %v511_v0 = vadd.f32 %v510_v59, %v506_v61  ;;  %vm501_vm9 = vmand %vm349_vm7, %vm478_vm8 }
 0x164   : > { %v472_v2 = vsub.f32 %v418_v62, %v466_v60  ;;  %v507_v3 = vsel %vm501_vm9, 1.0, %v742_v36 }
 0x165   : > { %v488_v4 = vadd.f32 %v487_v63, %v483_v1  ;;  %v512_v5 = vadd.f32 %v511_v0, %v507_v3 }
 0x166   : > { %v484_v6 = vsel %vm349_vm7, %v472_v2, 0.0 }
 0x167   : > { %v489_v7 = vadd.f32 %v488_v4, %v484_v6  ;;  %v513_v8 = vrot.slane %v512_v5, 4 }
 0x169   : > { %v490_v9 = vrot.slane %v489_v7, 4  ;;  %v514_v10 = vadd.f32 %v513_v8, %v512_v5 }
 0x16b   : > { %v491_v11 = vadd.f32 %v490_v9, %v489_v7  ;;  %v515_v12 = vrot.slane %v514_v10, 2 }
 0x16d   : > { %v492_v13 = vrot.slane %v491_v11, 2  ;;  %v516_v14 = vadd.f32 %v515_v12, %v514_v10 }
 0x16f   : > { %v493_v15 = vadd.f32 %v492_v13, %v491_v11  ;;  %v517_v16 = vrot.slane %v516_v14, 1 }
 0x171   : > { %v494_v18 = vrot.slane %v493_v15, 1  ;;  %v518_v19 = vadd.f32 %v517_v16, %v516_v14 }
 0x173   : > { %v495_v21 = vadd.f32 %v494_v18, %v493_v15  ;;  %v524_v22 = vadd.f32 %v523_v17, %v518_v19 }
 0x175   : > { %v520_v23 = vadd.f32 %v519_v20, %v495_v21  ;;  %525 = vst.msk [vmem:[%s808_s27] sm:$0x1] %vm521_vm10, %v524_v22 }
 0x177   : > { %522 = vst.msk [vmem:[%s803_s24] sm:$0x1] %vm521_vm10, %v520_v23 }
 0x178 PF: > { %s14_s16 = sadd.s32 1, %s738_s16   ;;  %s881_s12 = smov %s730_s14 }
 0x179   : > { %p11_p9 = scmp.ge.s32.totalorder %s14_s16, 8   ;;  %s882_s13 = smov %s734_s15 }
 0x17a   : > { %s883_s14 = smov %s886_s17  ;;  %s884_s15 = smov %s890_s18 }
 0x17b   :  { %13 = sbr.rel (!%p11_p9) target bundleno = 3 (0x3), region = 77 }

</bundles_post_ra>
